<compile_context>
chip_gen: v5e
topology: v5e:2x2
jax: 0.10.0
libtpu: 0.0.40
codegen_flags: <defaults>
</compile_context>

<pallas_src>
import jax
import jax.numpy as jnp
from jax.experimental import pallas as pl
from jax.experimental.pallas import tpu as pltpu


def _affine_kernel(w_ref, b_ref, x_ref, o_ref):
    # w_ref, b_ref are (1, 1) scalars in SMEM; x_ref/o_ref are VMEM tiles.
    o_ref[...] = w_ref[0, 0] * x_ref[...] + b_ref[0, 0]


_TARGET_BLOCK_BYTES = 4 * 1024 * 1024  # ~4 MiB f32 per block (x2 buffers x in/out = 16 MiB)


def _pick_lanes(n):
    """Widest lane-dense width (multiple of 128) dividing n; else 128 + tiny pad."""
    for lanes in (2048, 1024, 512, 256, 128):
        if n % lanes == 0:
            return lanes, 0
    return 128, (-n) % 128


def linear_regression_forward(x, weight, bias):
    """y = weight * x + bias, elementwise with scalar weight/bias (any shape)."""
    orig_shape = x.shape
    orig_dtype = x.dtype
    flat = jnp.ravel(x).astype(jnp.float32)
    n = flat.size

    lanes, pad = _pick_lanes(n)
    if pad:  # only when n is not a multiple of 128 (< 128 padded elements)
        flat = jnp.pad(flat, (0, pad))
    rows = (n + pad) // lanes
    x2d = flat.reshape(rows, lanes)  # contiguous reshape: no HBM copy

    # Rows per block: multiple of 8 (sublane), ~4 MiB per block, and at least
    # 2 grid steps when there is enough work so both v7x TensorCores help.
    target_rows = max(8, (_TARGET_BLOCK_BYTES // (4 * lanes)) // 8 * 8)
    half_rows = max(8, 8 * pl.cdiv(pl.cdiv(rows, 2), 8))
    tile_rows = min(target_rows, half_rows)
    if rows <= tile_rows:
        tile_rows = rows  # single block == full extent (always a legal block shape)
    grid = (pl.cdiv(rows, tile_rows),)  # ragged last block: OOB writes are dropped

    w2 = jnp.asarray(weight, jnp.float32).reshape(1, 1)
    b2 = jnp.asarray(bias, jnp.float32).reshape(1, 1)

    out2d = pl.pallas_call(
        _affine_kernel,
        out_shape=jax.ShapeDtypeStruct((rows, lanes), jnp.float32),
        grid_spec=pl.GridSpec(
            grid=grid,
            in_specs=[
                pl.BlockSpec(memory_space=pltpu.SMEM),   # weight scalar
                pl.BlockSpec(memory_space=pltpu.SMEM),   # bias scalar
                pl.BlockSpec((tile_rows, lanes), lambda i: (i, 0)),
            ],
            out_specs=pl.BlockSpec((tile_rows, lanes), lambda i: (i, 0)),
        ),
        compiler_params=pltpu.CompilerParams(
            dimension_semantics=("parallel",),
            # Raise the scoped-VMEM limit (v5e defaults to 16 MiB); 32 MiB is
            # safe on v5e/v6e/v7x and leaves headroom over the 16 MiB pipeline.
            vmem_limit_bytes=32 * 1024 * 1024,
        ),
        cost_estimate=pl.CostEstimate(
            flops=2 * n,
            transcendentals=0,
            bytes_accessed=2 * n * 4,
        ),
    )(w2, b2, x2d)

    out = out2d.reshape(-1)
    if pad:
        out = out[:n]
    return out.reshape(orig_shape).astype(orig_dtype)


if __name__ == "__main__":
    key = jax.random.PRNGKey(0)
    kx, kw, kb = jax.random.split(key, 3)

    # Deterministic parameter init (module: weights ~ randn(1), bias ~ randn(1)).
    weight = jax.random.normal(kw, (1,), dtype=jnp.float32)
    bias = jax.random.normal(kb, (1,), dtype=jnp.float32)

    # Small inputs of arbitrary rank — the op is a pure elementwise broadcast.
    test_shapes = [
        (2, 4, 16, 16),   # 2048 elems: zero-copy, single block
        (3, 5, 7),        # 105 elems: tiny pad path
        (13, 128, 10),    # 16640 elems: multi-step grid with a ragged last block
    ]
    for i, shape in enumerate(test_shapes):
        x = jax.random.normal(jax.random.fold_in(kx, i), shape, dtype=jnp.float32)
        y = jax.block_until_ready(linear_regression_forward(x, weight, bias))
        y_ref = weight[0] * x + bias[0]
        assert jnp.allclose(y, y_ref, atol=1e-6, rtol=1e-6), f"mismatch at {shape}"

    print("KERNEL_OK")
</pallas_src>

<mosaic_0001>
module attributes {stable_mosaic.version = 11 : i64} {
  func.func @_affine_kernel(%arg0: i32, %arg1: memref<1x1xf32, #tpu.memory_space<smem>>, %arg2: memref<1x1xf32, #tpu.memory_space<smem>>, %arg3: memref<1x2048xf32, #tpu.memory_space<vmem>>, %arg4: memref<1x2048xf32, #tpu.memory_space<vmem>>) attributes {dimension_semantics = [#tpu.dimension_semantics<parallel>], iteration_bounds = array<i64: 1>, scalar_prefetch = 0 : i64, scratch_operands = 0 : i64, tpu.core_type = #tpu.core_type<tc>, window_params = [{transform_indices = @transform_0, window_bounds = array<i64: 1, 1>}, {transform_indices = @transform_1, window_bounds = array<i64: 1, 1>}, {transform_indices = @transform_2, window_bounds = array<i64: 1, 2048>}, {transform_indices = @transform_3, window_bounds = array<i64: 1, 2048>}]} {
    %c0 = arith.constant 0 : index
    %c0_0 = arith.constant 0 : index
    %0 = memref.load %arg1[%c0, %c0_0] : memref<1x1xf32, #tpu.memory_space<smem>>
    %c0_1 = arith.constant 0 : index
    %c0_2 = arith.constant 0 : index
    %1 = vector.load %arg3[%c0_1, %c0_2] : memref<1x2048xf32, #tpu.memory_space<vmem>>, vector<1x2048xf32>
    %2 = vector.broadcast %0 : f32 to vector<1x2048xf32>
    %3 = arith.mulf %2, %1 : vector<1x2048xf32>
    %c0_3 = arith.constant 0 : index
    %c0_4 = arith.constant 0 : index
    %4 = memref.load %arg2[%c0_3, %c0_4] : memref<1x1xf32, #tpu.memory_space<smem>>
    %5 = vector.broadcast %4 : f32 to vector<1x2048xf32>
    %6 = arith.addf %3, %5 : vector<1x2048xf32>
    %c0_5 = arith.constant 0 : index
    %c0_6 = arith.constant 0 : index
    %7 = vector.load %arg4[%c0_5, %c0_6] : memref<1x2048xf32, #tpu.memory_space<vmem>>, vector<1x2048xf32>
    tpu.vector_store %arg4[%c0_5, %c0_6], %6 {strides = array<i32>} : memref<1x2048xf32, #tpu.memory_space<vmem>>, vector<1x2048xf32>,
    return
  }
  func.func @transform_0(%arg0: i32) -> (i32, i32) {
    %c0_i32 = arith.constant 0 : i32
    %c0_i32_0 = arith.constant 0 : i32
    %c0_i32_1 = arith.constant 0 : i32
    return %c0_i32, %c0_i32_0 : i32, i32
  }
  func.func @transform_1(%arg0: i32) -> (i32, i32) {
    %c0_i32 = arith.constant 0 : i32
    %c0_i32_0 = arith.constant 0 : i32
    %c0_i32_1 = arith.constant 0 : i32
    return %c0_i32, %c0_i32_0 : i32, i32
  }
  func.func @transform_2(%arg0: i32) -> (i32, i32) {
    %c0_i32 = arith.constant 0 : i32
    %c0_i32_0 = arith.constant 0 : i32
    return %arg0, %c0_i32 : i32, i32
  }
  func.func @transform_3(%arg0: i32) -> (i32, i32) {
    %c0_i32 = arith.constant 0 : i32
    %c0_i32_0 = arith.constant 0 : i32
    return %arg0, %c0_i32 : i32, i32
  }
}

</mosaic_0001>

<bundles_post_ra>
// kernel: tpu_custom_call.1
= control target key start
LH: loop header
LB: loop body
LE: loop exit
PB: predicated region body
PF: predicated region fallthrough
CT: control target
= control target key end

     0   :  { %10 = vsyncpa [#allocation5], 0  ;;  %s148_s0 = inlined_call_operand.<no memory space> [shape: f32[1,1], index: 0, kind: input, shape index: {}]   ;;  %s149_s1 = inlined_call_operand.<no memory space> [shape: f32[1,1], index: 1, kind: input, shape index: {}]   ;;  %s150_s2 = inlined_call_operand.hbm [shape: f32[1,2048], index: 2, kind: input, shape index: {}]   ;;  %s151_s3 = inlined_call_operand.hbm [shape: f32[1,2048], index: 3, kind: output, shape index: {}]  }
   0x1   :  { %11 = vsyncpa [#allocation6], 0  ;;  %s21_s14 = sshll.u32 %s150_s2, 4  ;;  %s114_s15 = smov [#allocation4]   ;;  %s22_s14 = int_to_ptr.hbm [resolvable:$true] %s21_s14 }
   0x2   :  { %s23_s16 = sshll.u32 %s114_s15, 4  ;;  %s24_s16 = int_to_ptr.vmem [resolvable:$true] %s23_s16 }
   0x3   :  { %26 = dma.hbm_to_vmem [thread:$0]  %s22_s14, 256, %s24_s16, [#allocation5]  }
   0x4   :  { %110 = dma.done.wait [#allocation5], 256  }
   0x5   :  { %111 = vsyncadd [#allocation5], 4294967040  ;;  %v34_v0 = vstv %s148_s0  ;;  %v32_v1 = vld [vmem:[#allocation4] sm:$0xff]  ;;  %v38_v2 = vstv %s149_s1  ;;  %v33_v3 = vld [vmem:[#allocation4 + $0x8] sm:$0xff]  ;;  %s115_s2 = smov [#allocation7]   ;;  %s50_s24 = sshll.u32 %s151_s3, 4  ;;  %s51_s24 = int_to_ptr.hbm [resolvable:$true] %s50_s24 }
   0x6   :  { %v35_v4 = vmul.f32 %v34_v0, %v32_v1  ;;  %v36_v5 = vmul.f32 %v34_v0, %v33_v3  ;;  %s48_s21 = sshll.u32 %s115_s2, 4  ;;  %s49_s21 = int_to_ptr.vmem [resolvable:$true] %s48_s21 }
   0x8   :  { %v39_v6 = vadd.f32 %v38_v2, %v35_v4  ;;  %v40_v7 = vadd.f32 %v38_v2, %v36_v5 }
   0xa   :  { %41 = vst [vmem:[#allocation7] sm:$0xff] %v39_v6 }
   0xb   :  { %42 = vst [vmem:[#allocation7 + $0x8] sm:$0xff] %v40_v7 }
   0xc   :  { %53 = dma.vmem_to_hbm [thread:$0]  %s49_s21, 256, %s51_s24, [#allocation6]  }
   0xd   :  { %112 = dma.done.wait [#allocation6], 256  }
   0xe   :  { %113 = vsyncadd [#allocation6], 4294967040 }
   0xf   :  { %58 = vsyncpa [#allocation5], 1 }
  0x10   :  { %59 = vsyncpa [#allocation6], 1 }

</bundles_post_ra>
